<compile_context>
chip_gen: v7x
topology: tpu7x:2x2x1
jax: 0.10.0
libtpu: 0.0.40
codegen_flags: <defaults>
</compile_context>

<pallas_src>
import functools

import jax
import jax.numpy as jnp
from jax.experimental import pallas as pl
from jax.experimental.pallas import tpu as pltpu

_LANE = 128
_SUBLANE = 8


def _cdiv(a, b):
    return -(-a // b)


def _round_up(a, b):
    return _cdiv(a, b) * b


def _chip_kind():
    try:
        return jax.devices()[0].device_kind.lower()
    except Exception:
        return ""


def _default_block_bytes():
    # ~1 MiB/input on v5 generation (16 MiB default scoped VMEM), 2 MiB/input
    # elsewhere (>= 85% of HBM roofline needs >= ~1 MiB; v7x's faster HBM makes
    # per-step overhead relatively larger, so stay at 2 MiB there too).
    return (1 << 20) if "v5" in _chip_kind() else (2 << 20)


def _default_vmem_limit():
    # 3 inputs x 2 double-buffers x block + elementwise temporaries; leave
    # headroom under v7x's 64 MiB physical VMEM.
    return (32 << 20) if "v5" in _chip_kind() else (48 << 20)


def _num_tensorcores():
    try:
        d = jax.devices()[0]
        nc = getattr(d, "num_cores", None)
        if isinstance(nc, int) and nc > 0:
            return nc
    except Exception:
        pass
    # Assume megacore-capable (v7x: 2 TCs); the block-size floor below keeps
    # this harmless on 1-TC chips (v5e/v6e).
    return 2


def _int_pow(base, n):
    """Exact small nonnegative-integer power as a VPU multiply chain (no EUP)."""
    n = int(n)
    if n == 0:
        return jnp.ones_like(base)
    result = None
    p = base
    while n > 0:
        if n & 1:
            result = p if result is None else result * p
        n >>= 1
        if n > 0:
            p = p * p
    return result


def _asl_kernel(x_ref, y_ref, m_ref, out_ref, *,
                gamma_neg, gamma_pos, clip, eps, alpha, hard_labels,
                n_rows, n_cols, tn, tc, mask_rows, mask_cols):
    x = x_ref[...].astype(jnp.float32)
    y = y_ref[...].astype(jnp.float32)
    m = m_ref[...].astype(jnp.float32)

    # sigmoid / asymmetric clipping
    xs_pos = jax.nn.sigmoid(x)            # EUP
    xs_neg = 1.0 - xs_pos
    if clip is not None and clip > 0:
        xs_neg = jnp.minimum(xs_neg + clip, 1.0)

    use_focal = (gamma_neg > 0) or (gamma_pos > 0)
    int_gammas = (
        isinstance(gamma_neg, (int, float)) and isinstance(gamma_pos, (int, float))
        and float(gamma_neg).is_integer() and float(gamma_pos).is_integer()
        and gamma_neg >= 0 and gamma_pos >= 0)

    if hard_labels:
        # Valid ONLY for y in {0, 1} (caller's responsibility): fuses the two
        # BCE logs into one select+log and uses exact integer-power multiply
        # chains, cutting EUP ops/elem ~6 -> ~3.
        pos = y > 0.5
        p_sel = jnp.where(pos, xs_pos, xs_neg)
        loss = jnp.log(jnp.maximum(p_sel, eps))       # single EUP log
        if alpha is not None:
            loss = jnp.where(pos, alpha * loss, loss)
        if use_focal:
            base = 1.0 - p_sel                        # == 1 - pt for hard labels
            if int_gammas:
                w = jnp.where(pos,
                              _int_pow(base, gamma_pos),
                              _int_pow(base, gamma_neg))
            else:
                w = jnp.power(jnp.maximum(base, 1e-30),
                              jnp.where(pos, gamma_pos, gamma_neg))
            loss = loss * w
    else:
        # General (soft-label) path: matches the PyTorch reference op-for-op.
        los_pos = y * jnp.log(jnp.maximum(xs_pos, eps))
        los_neg = (1.0 - y) * jnp.log(jnp.maximum(xs_neg, eps))
        if alpha is not None:
            los_pos = alpha * los_pos
        loss = los_pos + los_neg
        if use_focal:
            pt = xs_pos * y + xs_neg * (1.0 - y)
            one_sided_gamma = gamma_pos * y + gamma_neg * (1.0 - y)
            # tiny clamp guards exp(gamma*log(0)) -> NaN when a gamma is 0 and
            # pt == 1 exactly; difference from exact pow is <= 1e-30**gamma.
            loss = loss * jnp.power(jnp.maximum(1.0 - pt, 1e-30), one_sided_gamma)

    lm = loss * m

    # In-kernel ragged-tail masking (replaces wrapper-side jnp.pad): the
    # boundary blocks may contain garbage beyond N / C — select 0 there
    # (jnp.where, not multiply, so NaN/Inf garbage is also killed).
    valid = None
    if mask_rows:
        r = pl.program_id(0) * tn + jax.lax.broadcasted_iota(jnp.int32, (tn, tc), 0)
        valid = r < n_rows
    if mask_cols:
        c = pl.program_id(1) * tc + jax.lax.broadcasted_iota(jnp.int32, (tn, tc), 1)
        vc = c < n_cols
        valid = vc if valid is None else valid & vc
    if valid is not None:
        lm = jnp.where(valid, lm, 0.0)
        m = jnp.where(valid, m, 0.0)

    # Lane-dense per-block partial sums (sublane reduce only), single store.
    out_ref[0, :, :] = jnp.concatenate(
        [jnp.sum(lm, axis=0, keepdims=True),
         jnp.sum(m, axis=0, keepdims=True)], axis=0)


def balanced_asymmetric_loss(x, y, mask, *, gamma_neg=4, gamma_pos=1,
                             clip=0.05, alpha=None, eps=1e-8,
                             hard_labels=False, block_bytes=None):
    """Forward of Balanced_AsymmetricLoss. Returns a scalar (float32).

    gamma_neg / gamma_pos / clip / alpha / eps must be static Python numbers.
    Set hard_labels=True only when y is strictly binary (faster, fewer EUP ops).
    y / mask may be narrow dtypes (e.g. bf16); the kernel upcasts in VMEM.
    """
    assert x.shape == y.shape == mask.shape and x.ndim == 2
    N, C = x.shape

    if block_bytes is None:
        block_bytes = _default_block_bytes()
    vmem_limit = _default_vmem_limit()

    # ---- Column (class) tiling: a single lane-dense block if the row fits
    # the budget (block last dim == full C is always legal), else 128-multiple
    # tiles with the ragged tail masked in-kernel.
    max_tc = max(_LANE, (block_bytes // (4 * _SUBLANE)) // _LANE * _LANE)
    if C <= max_tc:
        tc, grid_c = C, 1
    else:
        tc = max_tc
        grid_c = _cdiv(C, tc)
    mask_cols = (grid_c > 1) and (C % tc != 0)

    # ---- Row (batch) tiling: as large as the VMEM budget allows, capped so
    # v7x megacore gets >= ~4 blocks per TensorCore, with a byte floor so
    # 1-TC chips don't pay ~0.35us/step overhead on tiny blocks.
    row_bytes = tc * 4                    # size by f32 worst case
    tn_vmem = max(_SUBLANE, (block_bytes // row_bytes) // _SUBLANE * _SUBLANE)
    tn_par = _round_up(max(1, _cdiv(N, 4 * _num_tensorcores())), _SUBLANE)
    floor_bytes = max(block_bytes // 4, 256 << 10)
    tn_floor = _round_up(max(1, _cdiv(floor_bytes, row_bytes)), _SUBLANE)
    tn = min(tn_vmem, max(tn_par, tn_floor))
    tn = max(_SUBLANE, min(tn, _round_up(N, _SUBLANE)))
    grid_n = _cdiv(N, tn)
    mask_rows = (N % tn) != 0

    kernel = functools.partial(
        _asl_kernel,
        gamma_neg=gamma_neg, gamma_pos=gamma_pos, clip=clip, eps=eps,
        alpha=alpha, hard_labels=hard_labels,
        n_rows=N, n_cols=C, tn=tn, tc=tc,
        mask_rows=mask_rows, mask_cols=mask_cols,
    )

    in_bytes = sum(int(a.size) * a.dtype.itemsize for a in (x, y, mask))
    out_bytes = grid_n * 2 * grid_c * tc * 4
    transc_per_elem = 3 if hard_labels else 6
    cost = pl.CostEstimate(
        flops=int(15 * N * C),
        transcendentals=int(transc_per_elem * N * C),
        bytes_accessed=int(in_bytes + out_bytes),
    )

    partials = pl.pallas_call(
        kernel,
        out_shape=jax.ShapeDtypeStruct((grid_n, 2, grid_c * tc), jnp.float32),
        grid_spec=pltpu.PrefetchScalarGridSpec(
            num_scalar_prefetch=0,
            grid=(grid_n, grid_c),
            in_specs=[
                pl.BlockSpec((tn, tc), lambda i, j: (i, j)),
                pl.BlockSpec((tn, tc), lambda i, j: (i, j)),
                pl.BlockSpec((tn, tc), lambda i, j: (i, j)),
            ],
            out_specs=pl.BlockSpec((1, 2, tc), lambda i, j: (i, 0, j)),
        ),
        compiler_params=pltpu.CompilerParams(
            dimension_semantics=("parallel", "parallel"),
            vmem_limit_bytes=vmem_limit),
        cost_estimate=cost,
    )(x, y, mask)

    # Cheap cross-lane/cross-block reduction + division in the wrapper.
    loss_sum = jnp.sum(partials[:, 0, :])
    mask_sum = jnp.sum(partials[:, 1, :])
    return -loss_sum / (mask_sum + eps)


def _reference(x, y, mask, *, gamma_neg=4, gamma_pos=1, clip=0.05,
               alpha=None, eps=1e-8):
    """Pure-JAX transcription of the PyTorch module."""
    xs_pos = jax.nn.sigmoid(x)
    xs_neg = 1.0 - xs_pos
    if clip is not None and clip > 0:
        xs_neg = jnp.minimum(xs_neg + clip, 1.0)
    los_pos = y * jnp.log(jnp.maximum(xs_pos, eps))
    los_neg = (1.0 - y) * jnp.log(jnp.maximum(xs_neg, eps))
    if alpha is not None:
        los_pos = alpha * los_pos
    loss = los_pos + los_neg
    if gamma_neg > 0 or gamma_pos > 0:
        pt = xs_pos * y + xs_neg * (1.0 - y)
        gamma = gamma_pos * y + gamma_neg * (1.0 - y)
        loss = loss * jnp.power(1.0 - pt, gamma)
    loss = loss * mask
    return -jnp.sum(loss) / (jnp.sum(mask) + eps)


if __name__ == "__main__":
    key = jax.random.PRNGKey(0)
    kx, ky, km, ks = jax.random.split(key, 4)

    # 1) Aligned rows, ragged class axis (C=80, not a multiple of 128).
    N, C = 16, 80
    x = jax.random.normal(kx, (N, C), dtype=jnp.float32)
    y = jax.random.bernoulli(ky, 0.3, (N, C)).astype(jnp.float32)
    mask = jax.random.bernoulli(km, 0.8, (N, C)).astype(jnp.float32)
    ref = jax.block_until_ready(_reference(x, y, mask))

    out_hard = jax.block_until_ready(
        balanced_asymmetric_loss(x, y, mask, hard_labels=True))
    assert jnp.allclose(out_hard, ref, rtol=1e-5, atol=1e-6), (out_hard, ref)

    out_gen = jax.block_until_ready(
        balanced_asymmetric_loss(x, y, mask, hard_labels=False))
    assert jnp.allclose(out_gen, ref, rtol=1e-5, atol=1e-6), (out_gen, ref)

    # 2) Ragged rows (N=19) + genuinely soft labels (general path, row tail
    #    masked inside the kernel — no jnp.pad anywhere).
    N2 = 19
    x2 = jax.random.normal(kx, (N2, C), dtype=jnp.float32)
    y2 = jax.random.uniform(ks, (N2, C), dtype=jnp.float32)
    m2 = jax.random.bernoulli(km, 0.8, (N2, C)).astype(jnp.float32)
    out2 = jax.block_until_ready(balanced_asymmetric_loss(x2, y2, m2))
    ref2 = jax.block_until_ready(_reference(x2, y2, m2))
    assert jnp.allclose(out2, ref2, rtol=1e-5, atol=1e-6), (out2, ref2)

    # 3) Narrow-dtype y/mask (bf16): kernel upcasts in VMEM, HBM traffic drops.
    out3 = jax.block_until_ready(
        balanced_asymmetric_loss(x, y.astype(jnp.bfloat16),
                                 mask.astype(jnp.bfloat16), hard_labels=True))
    assert jnp.allclose(out3, ref, rtol=1e-5, atol=1e-6), (out3, ref)

    # 4) Force column tiling (tiny block budget) to exercise the 2-D grid and
    #    in-kernel ragged-C masking (C=200 -> tc=128, grid_c=2).
    N4, C4 = 16, 200
    x4 = jax.random.normal(kx, (N4, C4), dtype=jnp.float32)
    y4 = jax.random.bernoulli(ky, 0.3, (N4, C4)).astype(jnp.float32)
    m4 = jax.random.bernoulli(km, 0.8, (N4, C4)).astype(jnp.float32)
    out4 = jax.block_until_ready(
        balanced_asymmetric_loss(x4, y4, m4, block_bytes=4096))
    ref4 = jax.block_until_ready(_reference(x4, y4, m4))
    assert jnp.allclose(out4, ref4, rtol=1e-5, atol=1e-6), (out4, ref4)

    print("KERNEL_OK")
</pallas_src>

<mosaic_0001>
module attributes {stable_mosaic.version = 11 : i64} {
  func.func @_asl_kernel(%arg0: i32, %arg1: i32, %arg2: memref<16x80xf32, #tpu.memory_space<vmem>>, %arg3: memref<16x80xf32, #tpu.memory_space<vmem>>, %arg4: memref<16x80xf32, #tpu.memory_space<vmem>>, %arg5: memref<1x2x80xf32, #tpu.memory_space<vmem>>) attributes {dimension_semantics = [#tpu.dimension_semantics<parallel>, #tpu.dimension_semantics<parallel>], iteration_bounds = array<i64: 1, 1>, scalar_prefetch = 0 : i64, scratch_operands = 0 : i64, tpu.core_type = #tpu.core_type<tc>, window_params = [{transform_indices = @transform_0, window_bounds = array<i64: 16, 80>}, {transform_indices = @transform_1, window_bounds = array<i64: 16, 80>}, {transform_indices = @transform_2, window_bounds = array<i64: 16, 80>}, {transform_indices = @transform_3, window_bounds = array<i64: 1, 2, 80>}]} {
    %c0 = arith.constant 0 : index
    %c0_0 = arith.constant 0 : index
    %0 = vector.load %arg2[%c0, %c0_0] : memref<16x80xf32, #tpu.memory_space<vmem>>, vector<16x80xf32>
    %c0_1 = arith.constant 0 : index
    %c0_2 = arith.constant 0 : index
    %1 = vector.load %arg3[%c0_1, %c0_2] : memref<16x80xf32, #tpu.memory_space<vmem>>, vector<16x80xf32>
    %c0_3 = arith.constant 0 : index
    %c0_4 = arith.constant 0 : index
    %2 = vector.load %arg4[%c0_3, %c0_4] : memref<16x80xf32, #tpu.memory_space<vmem>>, vector<16x80xf32>
    %3 = arith.negf %0 : vector<16x80xf32>
    %4 = math.exp %3 : vector<16x80xf32>
    %cst = arith.constant 1.000000e+00 : f32
    %5 = vector.broadcast %cst : f32 to vector<16x80xf32>
    %6 = arith.addf %5, %4 : vector<16x80xf32>
    %7 = arith.divf %5, %6 : vector<16x80xf32>
    %cst_5 = arith.constant 1.000000e+00 : f32
    %8 = vector.broadcast %cst_5 : f32 to vector<16x80xf32>
    %9 = arith.subf %8, %7 : vector<16x80xf32>
    %cst_6 = arith.constant 5.000000e-02 : f32
    %10 = vector.broadcast %cst_6 : f32 to vector<16x80xf32>
    %11 = arith.addf %9, %10 : vector<16x80xf32>
    %cst_7 = arith.constant 1.000000e+00 : f32
    %12 = vector.broadcast %cst_7 : f32 to vector<16x80xf32>
    %13 = arith.minimumf %11, %12 : vector<16x80xf32>
    %cst_8 = arith.constant 5.000000e-01 : f32
    %14 = vector.broadcast %cst_8 : f32 to vector<16x80xf32>
    %15 = arith.cmpf ogt, %1, %14 : vector<16x80xf32>
    %16 = arith.select %15, %7, %13 : vector<16x80xi1>, vector<16x80xf32>
    %cst_9 = arith.constant 9.99999993E-9 : f32
    %17 = vector.broadcast %cst_9 : f32 to vector<16x80xf32>
    %18 = arith.maximumf %16, %17 : vector<16x80xf32>
    %19 = math.log %18 : vector<16x80xf32>
    %cst_10 = arith.constant 1.000000e+00 : f32
    %20 = vector.broadcast %cst_10 : f32 to vector<16x80xf32>
    %21 = arith.subf %20, %16 : vector<16x80xf32>
    %22 = arith.mulf %21, %21 : vector<16x80xf32>
    %23 = arith.mulf %22, %22 : vector<16x80xf32>
    %24 = arith.select %15, %21, %23 : vector<16x80xi1>, vector<16x80xf32>
    %25 = arith.mulf %19, %24 : vector<16x80xf32>
    %26 = arith.mulf %25, %2 : vector<16x80xf32>
    %cst_11 = arith.constant dense<0.000000e+00> : vector<80xf32>
    %27 = vector.multi_reduction <add>, %26, %cst_11 [0] : vector<16x80xf32> to vector<80xf32>
    %28 = vector.shape_cast %27 : vector<80xf32> to vector<1x80xf32>
    %cst_12 = arith.constant dense<0.000000e+00> : vector<80xf32>
    %29 = vector.multi_reduction <add>, %2, %cst_12 [0] : vector<16x80xf32> to vector<80xf32>
    %30 = vector.shape_cast %29 : vector<80xf32> to vector<1x80xf32>
    %31 = tpu.concatenate %28, %30 in 0 : vector<1x80xf32>, vector<1x80xf32> -> vector<2x80xf32>
    %c0_13 = arith.constant 0 : index
    %c0_14 = arith.constant 0 : index
    %c0_15 = arith.constant 0 : index
    %32 = vector.load %arg5[%c0_13, %c0_14, %c0_15] : memref<1x2x80xf32, #tpu.memory_space<vmem>>, vector<1x2x80xf32>
    %33 = vector.shape_cast %32 : vector<1x2x80xf32> to vector<2x80xf32>
    %34 = vector.shape_cast %31 : vector<2x80xf32> to vector<1x2x80xf32>
    tpu.vector_store %arg5[%c0_13, %c0_14, %c0_15], %34 {strides = array<i32>} : memref<1x2x80xf32, #tpu.memory_space<vmem>>, vector<1x2x80xf32>,
    return
  }
  func.func @transform_0(%arg0: i32, %arg1: i32) -> (i32, i32) {
    %c0_i32 = arith.constant 0 : i32
    return %arg0, %arg1 : i32, i32
  }
  func.func @transform_1(%arg0: i32, %arg1: i32) -> (i32, i32) {
    %c0_i32 = arith.constant 0 : i32
    return %arg0, %arg1 : i32, i32
  }
  func.func @transform_2(%arg0: i32, %arg1: i32) -> (i32, i32) {
    %c0_i32 = arith.constant 0 : i32
    return %arg0, %arg1 : i32, i32
  }
  func.func @transform_3(%arg0: i32, %arg1: i32) -> (i32, i32, i32) {
    %c0_i32 = arith.constant 0 : i32
    %c0_i32_0 = arith.constant 0 : i32
    return %arg0, %c0_i32, %arg1 : i32, i32, i32
  }
}

</mosaic_0001>

<bundles_post_ra>
// kernel: tpu_custom_call.1
= control target key start
LH: loop header
LB: loop body
LE: loop exit
PB: predicated region body
PF: predicated region fallthrough
CT: control target
= control target key end

     0   :  { %8 = vsyncpa [#allocation3], 0  ;;  %s353_s0 = inlined_call_operand.hbm [shape: f32[16,80], index: 0, kind: input, shape index: {}]   ;;  %s354_s1 = inlined_call_operand.hbm [shape: f32[16,80], index: 1, kind: input, shape index: {}]   ;;  %s355_s2 = inlined_call_operand.hbm [shape: f32[16,80], index: 2, kind: input, shape index: {}]   ;;  %s356_s3 = inlined_call_operand.hbm [shape: f32[1,2,80], index: 3, kind: output, shape index: {}]  }
   0x1   :  { %9 = vsyncpa [#allocation6], 0 }
   0x2   :  { %10 = vsyncpa [#allocation4], 0  ;;  %s255_s12 = smov [#allocation5]   ;;  %s256_s14 = smov [#allocation2]  }
   0x3   :  { %s28_s13 = sshll.u32 %s255_s12, 4  ;;  %s16_s15 = sshll.u32 %s256_s14, 4  ;;  %s29_s13 = int_to_ptr.vmem [resolvable:$true] %s28_s13  ;;  %s281_s15 = int_to_ptr.vmem [resolvable:$true] %s16_s15 }
   0x4   :  { %s161_s18 = scalar_lea.hbm %s354_s1, 256 }
   0x5   :  { %p162_p0 = scmp.ne.s32.totalorder %s354_s1, %s161_s18  ;;  %p165_p1 = scmp.lt.u32.totalorder %s161_s18, %s354_s1 }
   0x7   :  { %p167_p2 = pnand %p165_p1, %p162_p0 }
   0x9   :  { %170 = shalt.err (!%p167_p2)
}
   0xa   :  { %s171_s23 = scalar_lea.vmem %s29_s13, 256  ;;  %p176_p4 = scmp.lt.s32.totalorder %s29_s13, %s29_s13 }
   0xb   :  { %p172_p3 = scmp.ne.s32.totalorder %s29_s13, %s171_s23  ;;  %p177_p5 = scmp.lt.s32.totalorder %s171_s23, %s171_s23 }
   0xd   :  { %p178_p6 = por %p177_p5, %p176_p4 }
   0xf   :  { %p179_p7 = pnand %p178_p6, %p172_p3 }
  0x11   :  { %182 = shalt.err (!%p179_p7)
}
  0x12   :  { %s257_s24 = smov 128   ;;  %s258_s25 = smov 8  }
  0x13   :  { %34 = dma.hbm_to_vmem [thread:$0]  %s354_s1, 256, %s29_s13, [#allocation6], %s257_s24, %s257_s24, %s258_s25  }
  0x14   :  { %s183_s30 = scalar_lea.hbm %s353_s0, 256 }
  0x15   :  { %p184_p8 = scmp.ne.s32.totalorder %s353_s0, %s183_s30  ;;  %p187_p9 = scmp.lt.u32.totalorder %s183_s30, %s353_s0 }
  0x17   :  { %p189_p10 = pnand %p187_p9, %p184_p8 }
  0x19   :  { %192 = shalt.err (!%p189_p10)
}
  0x1a   :  { %s193_s8 = scalar_lea.vmem %s281_s15, 256  ;;  %p198_p12 = scmp.lt.s32.totalorder %s281_s15, %s281_s15 }
  0x1b   :  { %p194_p11 = scmp.ne.s32.totalorder %s281_s15, %s193_s8  ;;  %p199_p13 = scmp.lt.s32.totalorder %s193_s8, %s193_s8 }
  0x1d   :  { %p200_p0 = por %p199_p13, %p198_p12 }
  0x1f   :  { %p201_p1 = pnand %p200_p0, %p194_p11 }
  0x21   :  { %204 = shalt.err (!%p201_p1)
}
  0x22   :  { %22 = dma.hbm_to_vmem [thread:$0]  %s353_s0, 256, %s281_s15, [#allocation3], %s257_s24, %s257_s24, %s258_s25  }
  0x23   :  { %s259_s10 = smov [#allocation7]   ;;  %s205_s14 = scalar_lea.hbm %s355_s2, 256 }
  0x24   :  { %s40_s11 = sshll.u32 %s259_s10, 4  ;;  %p206_p2 = scmp.ne.s32.totalorder %s355_s2, %s205_s14  ;;  %s41_s11 = int_to_ptr.vmem [resolvable:$true] %s40_s11 }
  0x25   :  { %p209_p3 = scmp.lt.u32.totalorder %s205_s14, %s355_s2 }
  0x27   :  { %p211_p4 = pnand %p209_p3, %p206_p2 }
  0x29   :  { %214 = shalt.err (!%p211_p4)
}
  0x2a   :  { %s215_s20 = scalar_lea.vmem %s41_s11, 256  ;;  %p220_p6 = scmp.lt.s32.totalorder %s41_s11, %s41_s11 }
  0x2b   :  { %p216_p5 = scmp.ne.s32.totalorder %s41_s11, %s215_s20  ;;  %p221_p7 = scmp.lt.s32.totalorder %s215_s20, %s215_s20 }
  0x2d   :  { %p222_p8 = por %p221_p7, %p220_p6 }
  0x2f   :  { %p223_p9 = pnand %p222_p8, %p216_p5 }
  0x31   :  { %226 = shalt.err (!%p223_p9)
}
  0x32   :  { %46 = dma.hbm_to_vmem [thread:$0]  %s355_s2, 256, %s41_s11, [#allocation6], %s257_s24, %s257_s24, %s258_s25  }
  0x33   :  { %249 = dma.done.wait [#allocation3], 256  }
  0x34   :  { %250 = vsyncadd [#allocation3], 4294967040 }
  0x35   :  { %251 = dma.done.wait [#allocation6], 512  }
  0x36   :  { %252 = vsyncadd [#allocation6], 4294966784  ;;  %v56_v0 = vld [vmem:[#allocation2] sm:$0xff]  ;;  %v57_v1 = vld [vmem:[#allocation2 + $0x8] sm:$0xff]  ;;  %vm102_vm2 = vcmask 654336   ;;  %s260_s2 = smov [#allocation8]  }
  0x37   :  { %v141_v2 = vmul.f32 -1.442695, %v56_v0  ;;  %v142_v3 = vmul.f32 -1.442695, %v57_v1  ;;  %v58_v10 = vld [vmem:[#allocation5] sm:$0xff]  ;;  %v59_v12 = vld [vmem:[#allocation5 + $0x8] sm:$0xff] }
  0x38   :  { %vm80_vm0 = vcmp.gt.f32.partialorder %v58_v10, 0.5  ;;  %vm81_vm1 = vcmp.gt.f32.partialorder %v59_v12, 0.5  ;;  %v60_v24 = vld [vmem:[#allocation7] sm:$0xff]  ;;  %v61_v25 = vld [vmem:[#allocation7 + $0x8] sm:$0xff]  ;;  %s131_s21 = sshll.u32 %s260_s2, 4  ;;  %vm121_vm3 = vcmask 1040384   ;;  %s132_s21 = int_to_ptr.vmem [resolvable:$true] %s131_s21 }
  0x39   :  { %149 = vpow2.f32 %v141_v2  ;;  %v112_v27 = vsel %vm102_vm2, %v60_v24, 0.0  ;;  %v113_v28 = vsel %vm102_vm2, %v61_v25, 0.0  ;;  %vm123_vm4 = vcmask 648192   ;;  %s227_s22 = scalar_lea.vmem %s132_s21, 32  ;;  %p232_p11 = scmp.lt.s32.totalorder %s132_s21, %s132_s21 }
  0x3a   :  { %151 = vpow2.f32 %v142_v3  ;;  %v114_v30 = vadd.f32 %v113_v28, %v112_v27  ;;  %p228_p10 = scmp.ne.s32.totalorder %s132_s21, %s227_s22  ;;  %p233_p12 = scmp.lt.s32.totalorder %s227_s22, %s227_s22 }
  0x3c   :  { %v115_v33 = vrot.slane %v114_v30, 4  ;;  %p234_p13 = por %p233_p12, %p232_p11 }
  0x3e   :  { %v116_v41 = vadd.f32 %v115_v33, %v114_v30  ;;  %p235_p0 = pnand %p234_p13, %p228_p10 }
  0x40   :  { %v117_v46 = vrot.slane %v116_v41, 2 }
  0x42   :  { %v118_v50 = vadd.f32 %v117_v46, %v116_v41 }
  0x43   :  { %v150_v4 = vpop.eup %149 }
  0x44   :  { %v152_v5 = vpop.eup %151  ;;  %v68_v6 = vadd.f32 1.0, %v150_v4  ;;  %v119_v53 = vrot.slane %v118_v50, 1 }
  0x45   :  { %v69_v7 = vadd.f32 1.0, %v152_v5 }
  0x46   :  { %153 = vrcp.f32 %v68_v6  ;;  %v120_v56 = vadd.f32 %v119_v53, %v118_v50 }
  0x47   :  { %155 = vrcp.f32 %v69_v7 }
  0x50   :  { %v154_v8 = vpop.eup %153 }
  0x51   :  { %v156_v9 = vpop.eup %155  ;;  %v74_v11 = vsub.f32 1.0, %v154_v8 }
  0x52   :  { %v75_v13 = vsub.f32 1.0, %v156_v9 }
  0x53   :  { %v76_v14 = vadd.f32 0.05, %v74_v11 }
  0x54   :  { %v77_v15 = vadd.f32 0.05, %v75_v13 }
  0x55   :  { %v78_v16 = vmin.f32 %v76_v14, 1.0 }
  0x56   :  { %v79_v17 = vmin.f32 %v77_v15, 1.0 }
  0x57   :  { %v82_v18 = vsel %vm80_vm0, %v154_v8, %v78_v16 }
  0x58   :  { %v83_v19 = vsel %vm81_vm1, %v156_v9, %v79_v17  ;;  %v84_v20 = vmax.f32 %v82_v18, 1e-08  ;;  %v90_v21 = vsub.f32 1.0, %v82_v18 }
  0x59   :  { %v85_v22 = vmax.f32 %v83_v19, 1e-08  ;;  %v91_v23 = vsub.f32 1.0, %v83_v19 }
  0x5a   :  { %157 = vlog2.f32 %v84_v20  ;;  %v92_v26 = vmul.f32 %v90_v21, %v90_v21 }
  0x5b   :  { %159 = vlog2.f32 %v85_v22  ;;  %v93_v29 = vmul.f32 %v91_v23, %v91_v23 }
  0x5c   :  { %v94_v31 = vmul.f32 %v92_v26, %v92_v26 }
  0x5d   :  { %v95_v32 = vmul.f32 %v93_v29, %v93_v29 }
  0x5e   :  { %v96_v35 = vsel %vm80_vm0, %v90_v21, %v94_v31 }
  0x5f   :  { %v97_v38 = vsel %vm81_vm1, %v91_v23, %v95_v32 }
  0x64   :  { %v158_v34 = vpop.eup %157 }
  0x65   :  { %v160_v36 = vpop.eup %159  ;;  %v87_v37 = vmul.f32 0.6931472, %v158_v34 }
  0x66   :  { %v89_v39 = vmul.f32 0.6931472, %v160_v36 }
  0x67   :  { %v98_v40 = vmul.f32 %v96_v35, %v87_v37 }
  0x68   :  { %v99_v42 = vmul.f32 %v97_v38, %v89_v39 }
  0x69   :  { %v100_v43 = vmul.f32 %v98_v40, %v60_v24 }
  0x6a   :  { %v101_v44 = vmul.f32 %v99_v42, %v61_v25 }
  0x6b   :  { %v103_v45 = vsel %vm102_vm2, %v100_v43, 0.0 }
  0x6c   :  { %v104_v47 = vsel %vm102_vm2, %v101_v44, 0.0 }
  0x6d   :  { %v105_v48 = vadd.f32 %v104_v47, %v103_v45 }
  0x6f   :  { %v106_v49 = vrot.slane %v105_v48, 4 }
  0x71   :  { %v107_v51 = vadd.f32 %v106_v49, %v105_v48 }
  0x73   :  { %v108_v52 = vrot.slane %v107_v51, 2 }
  0x75   :  { %v109_v54 = vadd.f32 %v108_v52, %v107_v51 }
  0x77   :  { %v110_v55 = vrot.slane %v109_v54, 1 }
  0x79   :  { %v111_v57 = vadd.f32 %v110_v55, %v109_v54 }
  0x7b   :  { %v122_v58 = vsel %vm121_vm3, %v111_v57, %v120_v56 }
  0x7c   :  { %124 = vst.msk [vmem:[#allocation8] sm:$0x3] %vm123_vm4, %v122_v58 }
  0x7d   :  { %238 = shalt.err (!%p235_p0)
}
  0x7e   :  { %s239_s25 = scalar_lea.hbm %s356_s3, 32 }
  0x7f   :  { %p240_p1 = scmp.ne.s32.totalorder %s356_s3, %s239_s25  ;;  %p243_p2 = scmp.lt.u32.totalorder %s239_s25, %s356_s3 }
  0x81   :  { %p245_p3 = pnand %p243_p2, %p240_p1 }
  0x83   :  { %248 = shalt.err (!%p245_p3)
}
  0x84   :  { %134 = dma.vmem_to_hbm [thread:$0]  %s132_s21, 32, %s356_s3, [#allocation4]  }
  0x85   :  { %253 = dma.done.wait [#allocation4], 32  }
  0x86   :  { %254 = vsyncadd [#allocation4], 4294967264 }
  0x87   :  { %138 = vsyncpa [#allocation3], 1 }
  0x88   :  { %139 = vsyncpa [#allocation6], 1 }
  0x89   :  { %140 = vsyncpa [#allocation4], 1 }

</bundles_post_ra>
